<compile_context>
chip_gen: v5e
topology: v5e:2x2
jax: 0.10.0
libtpu: 0.0.40
codegen_flags: <defaults>
</compile_context>

<pallas_src>
import functools
import math

import jax
import jax.numpy as jnp
from jax.experimental import pallas as pl
from jax.experimental.pallas import tpu as pltpu


def _round_up(x, m):
    return (x + m - 1) // m * m


def _embed_gather_kernel(ids_ref, table_hbm, out_ref, sem, *, block_tokens, scale):
    """Gather `block_tokens` embedding rows from HBM into out_ref, scale in place.

    ids_ref:   (n_pad,) int32 token ids in SMEM (scalar prefetch).
    table_hbm: (vocab, d_model) embedding table left in HBM (pl.ANY).
    out_ref:   (block_tokens, d_model) output tile in VMEM (also DMA target).
    sem:       DMA completion semaphore shared by all row copies.
    """
    base = pl.program_id(0) * block_tokens

    # Fire-and-forget: issue every row-gather DMA for this token block,
    # landing each row directly in its final slot of the output tile.
    @pl.loop(0, block_tokens)
    def _start(i):
        tok = ids_ref[base + i]
        pltpu.make_async_copy(
            table_hbm.at[pl.ds(tok, 1), :],
            out_ref.at[pl.ds(i, 1), :],
            sem,
        ).start()

    # DMA semaphores count bytes: one wait sized to the full (T, d_model)
    # tile covers all `block_tokens` row copies issued above.
    pltpu.make_async_copy(out_ref, out_ref, sem).wait()

    # Single dense scaled store; multiply in f32 (safe on v5e for bf16 tables).
    rows = out_ref[...].astype(jnp.float32)
    out_ref[...] = (rows * scale).astype(out_ref.dtype)


def embeddings_forward(token_ids, lut_weight, *, block_tokens=512):
    """Pallas equivalent of Embeddings.forward.

    token_ids:  (B, S) integer token ids
    lut_weight: (vocab, d_model) embedding table
    returns:    (B, S, d_model) in lut_weight.dtype  (== lut(x) * sqrt(d_model))
    """
    B, S = token_ids.shape
    vocab, d_model = lut_weight.shape
    n_tok = B * S
    scale = math.sqrt(d_model)
    itemsize = jnp.dtype(lut_weight.dtype).itemsize

    # Clamp ids so an out-of-range id cannot cause an OOB HBM DMA.
    flat_ids = jnp.clip(token_ids.reshape(n_tok).astype(jnp.int32), 0, vocab - 1)

    # Tokens per grid step: sublane-aligned (f32 min tile sublane = 8), capped
    # so the double-buffered (T, d_model) output tile stays well inside VMEM,
    # and no larger than the (padded) token count for tiny inputs.
    vmem_budget = 8 * 1024 * 1024  # bytes for the output tile (x2 buffers)
    cap = max(8, (vmem_budget // (2 * d_model * itemsize)) // 8 * 8)
    T = min(_round_up(block_tokens, 8), _round_up(n_tok, 8), cap)
    T = max(8, T)

    n_pad = _round_up(n_tok, T)
    if n_pad != n_tok:
        flat_ids = jnp.pad(flat_ids, (0, n_pad - n_tok))  # pad with id 0 (valid)

    # TODO(synk): for very small d_model one could fold several tokens into the
    # lane axis (present a (n_pad/k, k*d_model) output slab) so output stores
    # are fully lane-dense; typical transformer d_model >= 128 already is.
    grid_spec = pltpu.PrefetchScalarGridSpec(
        num_scalar_prefetch=1,
        grid=(n_pad // T,),
        in_specs=[
            # Table stays in HBM; rows are gathered by in-kernel DMAs.
            pl.BlockSpec(memory_space=pl.ANY),
        ],
        out_specs=pl.BlockSpec((T, d_model), lambda i, ids: (i, 0)),
        scratch_shapes=[
            pltpu.SemaphoreType.DMA,
        ],
    )

    out_flat = pl.pallas_call(
        functools.partial(_embed_gather_kernel, block_tokens=T, scale=scale),
        out_shape=jax.ShapeDtypeStruct((n_pad, d_model), lut_weight.dtype),
        grid_spec=grid_spec,
        compiler_params=pltpu.CompilerParams(
            dimension_semantics=("parallel",),
        ),
    )(flat_ids, lut_weight)

    return out_flat[:n_tok].reshape(B, S, d_model)


if __name__ == "__main__":
    # Small, deterministic setup consistent with the module's __init__.
    B, S = 2, 8
    vocab, d_model = 64, 32

    key = jax.random.PRNGKey(0)
    k_w, k_ids = jax.random.split(key)

    # nn.init.normal_(weight, mean=0, std=d_model ** -0.5)
    lut_weight = (
        jax.random.normal(k_w, (vocab, d_model), dtype=jnp.float32)
        * (d_model ** -0.5)
    )
    token_ids = jax.random.randint(k_ids, (B, S), 0, vocab, dtype=jnp.int32)

    out = embeddings_forward(token_ids, lut_weight)
    out = jax.block_until_ready(out)

    # Reference check (plain JAX gather + scale).
    ref = lut_weight[token_ids] * math.sqrt(d_model)
    assert out.shape == (B, S, d_model)
    assert jnp.allclose(out, ref, atol=1e-5), "mismatch vs reference"

    print("KERNEL_OK")
</pallas_src>

<mosaic_0001>
module attributes {stable_mosaic.version = 11 : i64} {
  func.func @_embed_gather_kernel(%arg0: i32, %arg1: memref<16xi32, #tpu.memory_space<smem>>, %arg2: memref<64x32xf32, #tpu.memory_space<any>>, %arg3: memref<16x32xf32, #tpu.memory_space<vmem>>, %arg4: memref<!tpu.dma_semaphore, #tpu.memory_space<semaphore_mem>>) attributes {dimension_semantics = [#tpu.dimension_semantics<parallel>], iteration_bounds = array<i64: 1>, scalar_prefetch = 1 : i64, scratch_operands = 1 : i64, tpu.core_type = #tpu.core_type<tc>, window_params = [{}, {transform_indices = @transform_1, window_bounds = array<i64: 16, 32>}]} {
    %c16_i32 = arith.constant 16 : i32
    %0 = arith.muli %arg0, %c16_i32 : i32
    %c0_i32 = arith.constant 0 : i32
    %c16_i32_0 = arith.constant 16 : i32
    %1 = arith.addi %c0_i32, %c16_i32_0 : i32
    %c1_i32 = arith.constant 1 : i32
    scf.for %arg5 = %c0_i32 to %1 step %c1_i32  : i32 {
      %c1_i32_5 = arith.constant 1 : i32
      %6 = arith.muli %arg5, %c1_i32_5 : i32
      %c0_i32_6 = arith.constant 0 : i32
      %7 = arith.addi %c0_i32_6, %6 : i32
      %8 = arith.addi %0, %7 : i32
      %9 = arith.index_cast %8 : i32 to index
      %10 = memref.load %arg1[%9] : memref<16xi32, #tpu.memory_space<smem>>
      %c0_i32_7 = arith.constant 0 : i32
      %11 = tpu.memref_slice %arg2[%10, %c0_i32_7] : memref<64x32xf32, #tpu.memory_space<any>> -> memref<1x32xf32, #tpu.memory_space<any>>
      %c0_i32_8 = arith.constant 0 : i32
      %12 = tpu.memref_slice %arg3[%7, %c0_i32_8] : memref<16x32xf32, #tpu.memory_space<vmem>> -> memref<1x32xf32, #tpu.memory_space<vmem>>
      tpu.enqueue_dma source(%11 : memref<1x32xf32, #tpu.memory_space<any>>) target(%12 : memref<1x32xf32, #tpu.memory_space<vmem>>) target_semaphore(%arg4 : memref<!tpu.dma_semaphore, #tpu.memory_space<semaphore_mem>>)
    }
    %c16_i32_1 = arith.constant 16 : i32
    tpu.wait_dma2 semaphore(%arg4 : memref<!tpu.dma_semaphore, #tpu.memory_space<semaphore_mem>>) src(%arg3 : memref<16x32xf32, #tpu.memory_space<vmem>>) dst(%arg3 : memref<16x32xf32, #tpu.memory_space<vmem>>)
    %c0 = arith.constant 0 : index
    %c0_2 = arith.constant 0 : index
    %2 = vector.load %arg3[%c0, %c0_2] : memref<16x32xf32, #tpu.memory_space<vmem>>, vector<16x32xf32>
    %cst = arith.constant 5.65685415 : f32
    %3 = vector.broadcast %cst : f32 to vector<16x32xf32>
    %4 = arith.mulf %2, %3 : vector<16x32xf32>
    %c0_3 = arith.constant 0 : index
    %c0_4 = arith.constant 0 : index
    %5 = vector.load %arg3[%c0_3, %c0_4] : memref<16x32xf32, #tpu.memory_space<vmem>>, vector<16x32xf32>
    tpu.vector_store %arg3[%c0_3, %c0_4], %4 {strides = array<i32>} : memref<16x32xf32, #tpu.memory_space<vmem>>, vector<16x32xf32>,
    return
  }
  func.func @transform_1(%arg0: i32, %arg1: memref<16xi32, #tpu.memory_space<smem>>) -> (i32, i32) {
    %c0_i32 = arith.constant 0 : i32
    %c0_i32_0 = arith.constant 0 : i32
    return %arg0, %c0_i32 : i32, i32
  }
}

</mosaic_0001>

<bundles_post_ra>
// kernel: tpu_custom_call.1
= control target key start
LH: loop header
LB: loop body
LE: loop exit
PB: predicated region body
PF: predicated region fallthrough
CT: control target
= control target key end

     0   :  { %s169_s12 = smov [#allocation4]   ;;  %s197_s0 = inlined_call_operand.vmem [shape: s32[16], index: 0, kind: input, shape index: {}]   ;;  %s198_s1 = inlined_call_operand.vmem [shape: f32[64,32], index: 1, kind: input, shape index: {}]   ;;  %s199_s2 = inlined_call_operand.hbm [shape: f32[16,32], index: 2, kind: output, shape index: {}]  }
   0x1   :  { %s8_s11 = sshll.u32 %s197_s0, 4  ;;  %s9_s11 = int_to_ptr.vmem [resolvable:$true] %s8_s11 }
   0x2   :  { %11 = dma.vmem_to_smem %s9_s11, 16, %s169_s12, [#allocation3] }
   0x3   :  { %159 = dma.done.wait [#allocation3], 16 }
   0x4   :  { %160 = vsyncadd [#allocation3], 4294967280 }
   0x5   :  { %14 = sfence }
   0x6   :  { %15 = vsyncpa [#allocation6], 0  ;;  %s165_s13 = smov 0  }
   0x7 LB: > { %s24_s14 = sld [smem:[#allocation4 + %s167_s13]]  ;;  %s26_s18 = scalar_lea.vmem [#allocation5], %s167_s13  ;;  %s167_s13 = sphi %s165_s13, %s22_s13  }
   0xd   : > { %s25_s17 = scalar_lea.vmem %s198_s1, %s24_s14 }
   0xe   : > { %v41_v0 = vld [vmem:[%s25_s17] sm:$0x1] }
   0xf   : > { %42 = vst [vmem:[%s26_s18] sm:$0x1] %v41_v0 }
  0x10   : > { %60 = vsyncadd [#allocation2], 16  ;;  %s22_s13 = sadd.s32 1, %s167_s13  }
  0x11   : > { %p19_p0 = scmp.ge.s32.totalorder %s22_s13, 16  }
  0x13   :  { %21 = sbr.rel (!%p19_p0) target bundleno = 7 (0x7), region = 63 }
  0x18   :  { %161 = dma.done.wait [#allocation2], 256 }
  0x19   :  { %162 = vsyncadd [#allocation2], 4294967040  ;;  %s170_s0 = smov [#allocation5]   ;;  %s77_s22 = sshll.u32 %s199_s2, 4  ;;  %v64_v1 = vld [vmem:[#allocation5] sm:$0xff]  ;;  %vm68_vm0 = vcmask 261120   ;;  %s78_s22 = int_to_ptr.hbm [resolvable:$true] %s77_s22 }
  0x1a   :  { %s75_s19 = sshll.u32 %s170_s0, 4  ;;  %v65_v2 = vld [vmem:[#allocation5 + $0x8] sm:$0xff]  ;;  %v66_v3 = vmul.f32 5.656854, %v64_v1  ;;  %s171_s23 = smov 128   ;;  %s76_s19 = int_to_ptr.vmem [resolvable:$true] %s75_s19 }
  0x1b   :  { %v67_v4 = vmul.f32 5.656854, %v65_v2  ;;  %s172_s24 = smov 8  }
  0x1c   :  { %69 = vst.msk [vmem:[#allocation5] sm:$0xff] %vm68_vm0, %v66_v3 }
  0x1d   :  { %70 = vst.msk [vmem:[#allocation5 + $0x8] sm:$0xff] %vm68_vm0, %v67_v4 }
  0x1e   :  { %83 = dma.vmem_to_hbm [thread:$0]  %s76_s19, 256, %s78_s22, [#allocation6], %s171_s23, %s171_s23, %s172_s24  }
  0x1f   :  { %163 = dma.done.wait [#allocation6], 256  }
  0x20   :  { %164 = vsyncadd [#allocation6], 4294967040 }
  0x21   :  { %88 = vsyncpa [#allocation6], 1 }
  0x22   :  { %89 = vsyncmov [#allocation2] }
  0x25   :  { %s90_s1 = vpop.sfrf %89 }
  0x26   :  { %p106_p1 = scmp.ne.s32.totalorder %s90_s1, 0 }
  0x28   :  { %94 = shalt.err (%p106_p1)  }

</bundles_post_ra>
